<compile_context>
chip_gen: v5e
topology: v5e:2x2
jax: 0.10.0
libtpu: 0.0.40
codegen_flags: <defaults>
</compile_context>

<pallas_src>
import functools
import math

import jax
import jax.numpy as jnp
from jax.experimental import pallas as pl
from jax.experimental.pallas import tpu as pltpu

_LANE = 128
_SUBLANE = 8
_INV_SQRT2 = 1.0 / math.sqrt(2.0)


def _round_up(x, m):
    return ((x + m - 1) // m) * m


def _gelu_exact(y):
    # F.gelu default: 0.5 * x * (1 + erf(x / sqrt(2)))  (computed in f32)
    return 0.5 * y * (1.0 + jax.lax.erf(y * jnp.float32(_INV_SQRT2)))


def _pad_feature(d):
    """Pad a feature dim: 128 for small dims, 256-aligned for larger (MXU fill)."""
    if d <= _LANE:
        return _LANE
    return _round_up(d, 2 * _LANE)


def _pick_m_tiling(m):
    """Return (padded M, tm).  tm is a multiple of 8; >=2 M-tiles when feasible."""
    mp = _round_up(max(m, 1), _SUBLANE)
    if mp <= _SUBLANE:
        return mp, mp
    if mp <= 1024:
        mp = _round_up(mp, 2 * _SUBLANE)
        return mp, mp // 2          # two tiles -> both TCs / megacore usable
    mp = _round_up(m, 512)
    return mp, 512


def _pick_tile(dim_pad):
    """Largest tile in {512,256,128} dividing dim_pad (dim_pad is 128 or 256k)."""
    for c in (512, 256, 128):
        if dim_pad % c == 0:
            return c
    return dim_pad


def _vmem_physical_bytes():
    try:
        return int(pltpu.get_tpu_info().vmem_capacity_bytes)
    except Exception:
        return 64 * 1024 * 1024      # conservative (v7x per-TC)


def _vmem_limit_for(footprint_bytes):
    """Scoped-VMEM limit: cover the footprint with headroom, stay below physical."""
    phys = _vmem_physical_bytes()
    want = max(int(footprint_bytes * 1.25) + (4 << 20), 32 << 20)
    return int(min(int(phys * 0.9), want))


# ----------------------------------------------------------------------------
# Tiled single-layer Linear (+ optional GELU) kernel
# ----------------------------------------------------------------------------
def _linear_tiled_kernel(x_ref, w_ref, b_ref, o_ref, acc_ref, *, apply_gelu):
    k = pl.program_id(2)

    @pl.when(k == 0)
    def _():
        acc_ref[...] = jnp.zeros_like(acc_ref)

    acc_ref[...] += jnp.dot(x_ref[...], w_ref[...],
                            preferred_element_type=jnp.float32)

    @pl.when(k == pl.num_programs(2) - 1)
    def _():
        y = acc_ref[...] + b_ref[...]            # (tm, tn) f32 + (1, tn) f32
        if apply_gelu:
            y = _gelu_exact(y)
        o_ref[...] = y.astype(o_ref.dtype)


def _pallas_linear(x_pad, w_pad, b_pad, *, tm, apply_gelu, out_dtype):
    """x_pad: [Mp, Kp] bf16, w_pad: [Kp, Np] bf16 (W^T), b_pad: [1, Np] f32."""
    mpad, kpad = x_pad.shape
    kpad2, npad = w_pad.shape
    assert kpad == kpad2
    tk = _pick_tile(kpad)
    tn = _pick_tile(npad)
    grid = (mpad // tm, npad // tn, kpad // tk)

    out_itemsize = 2 if out_dtype == jnp.bfloat16 else 4
    flops = 2 * mpad * npad * kpad
    transcendentals = mpad * npad if apply_gelu else 0
    bytes_accessed = (mpad * kpad * 2 + kpad * npad * 2 + npad * 4
                      + mpad * npad * out_itemsize)
    # double-buffered x/w/out tiles + f32 accumulator + bias
    footprint = (2 * tm * tk * 2 + 2 * tk * tn * 2
                 + 2 * tm * tn * out_itemsize + tm * tn * 4 + 2 * tn * 4)

    kernel = functools.partial(_linear_tiled_kernel, apply_gelu=apply_gelu)
    return pl.pallas_call(
        kernel,
        out_shape=jax.ShapeDtypeStruct((mpad, npad), out_dtype),
        grid_spec=pltpu.PrefetchScalarGridSpec(
            num_scalar_prefetch=0,
            grid=grid,
            in_specs=[
                pl.BlockSpec((tm, tk), lambda i, j, k: (i, k)),
                pl.BlockSpec((tk, tn), lambda i, j, k: (k, j)),
                pl.BlockSpec((1, tn), lambda i, j, k: (0, j)),
            ],
            out_specs=pl.BlockSpec((tm, tn), lambda i, j, k: (i, j)),
            scratch_shapes=[pltpu.VMEM((tm, tn), jnp.float32)],
        ),
        compiler_params=pltpu.CompilerParams(
            dimension_semantics=("parallel", "parallel", "arbitrary"),
            vmem_limit_bytes=_vmem_limit_for(footprint)),
        cost_estimate=pl.CostEstimate(flops=flops,
                                      transcendentals=transcendentals,
                                      bytes_accessed=bytes_accessed),
    )(x_pad, w_pad, b_pad)


# ----------------------------------------------------------------------------
# Fused whole-MLP kernel: grid = (M_tiles, L), weights streamed per layer,
# activation kept resident in a VMEM scratch across the layer axis.
# ----------------------------------------------------------------------------
def _fused_mlp_kernel(x_ref, w_ref, b_ref, o_ref, h_ref, *, num_layers):
    l = pl.program_id(1)

    @pl.when(l == 0)
    def _():
        h_ref[...] = x_ref[...]                   # (tm, D) bf16

    y = jnp.dot(h_ref[...], w_ref[0], preferred_element_type=jnp.float32)
    y = y + b_ref[0]                              # (tm, D) + (1, D), f32

    @pl.when(l < num_layers - 1)
    def _():
        h_ref[...] = _gelu_exact(y).astype(h_ref.dtype)

    @pl.when(l == num_layers - 1)
    def _():
        o_ref[...] = y.astype(o_ref.dtype)


def _pallas_mlp_fused(x_pad, w_stack, b_stack, *, tm, num_layers, out_dtype):
    """x_pad: [Mp, D] bf16, w_stack: [L, D, D] bf16 (W^T), b_stack: [L, 1, D] f32."""
    mpad, d = x_pad.shape
    num_l = w_stack.shape[0]
    out_itemsize = 2 if out_dtype == jnp.bfloat16 else 4
    flops = 2 * mpad * d * d * num_l
    transcendentals = mpad * d * max(num_l - 1, 0)
    bytes_accessed = (mpad * d * 2 + num_l * d * d * 2 + num_l * d * 4
                      + mpad * d * out_itemsize)
    # 2x streamed weight/bias blocks + 2x x/out tiles + h scratch + f32 temps
    footprint = (2 * d * d * 2 + 2 * d * 4
                 + 2 * tm * d * 2 + 2 * tm * d * out_itemsize
                 + tm * d * 2 + 2 * tm * d * 4)

    kernel = functools.partial(_fused_mlp_kernel, num_layers=num_layers)
    return pl.pallas_call(
        kernel,
        out_shape=jax.ShapeDtypeStruct((mpad, d), out_dtype),
        grid_spec=pltpu.PrefetchScalarGridSpec(
            num_scalar_prefetch=0,
            grid=(mpad // tm, num_l),
            in_specs=[
                pl.BlockSpec((tm, d), lambda i, l: (i, 0)),
                pl.BlockSpec((1, d, d), lambda i, l: (l, 0, 0)),
                pl.BlockSpec((1, 1, d), lambda i, l: (l, 0, 0)),
            ],
            out_specs=pl.BlockSpec((tm, d), lambda i, l: (i, 0)),
            scratch_shapes=[pltpu.VMEM((tm, d), jnp.bfloat16)],
        ),
        compiler_params=pltpu.CompilerParams(
            dimension_semantics=("parallel", "arbitrary"),
            vmem_limit_bytes=_vmem_limit_for(footprint)),
        cost_estimate=pl.CostEstimate(flops=flops,
                                      transcendentals=transcendentals,
                                      bytes_accessed=bytes_accessed),
    )(x_pad, w_stack, b_stack)


# ----------------------------------------------------------------------------
# Parameters, one-time preparation, forward wrapper (PyTorch MLP semantics)
# ----------------------------------------------------------------------------
def init_mlp_params(key, input_dim, hidden_dim, output_dim, num_layers):
    """PyTorch-shaped params: list of (W [out, in] f32, b [out] f32)."""
    if num_layers <= 0:
        return []
    h = [hidden_dim] * (num_layers - 1)
    in_dims = [input_dim] + h
    out_dims = h + [output_dim]
    params = []
    for n_in, n_out in zip(in_dims, out_dims):
        key, kw, kb = jax.random.split(key, 3)
        bound = 1.0 / math.sqrt(n_in)
        w = jax.random.uniform(kw, (n_out, n_in), jnp.float32, -bound, bound)
        b = jax.random.uniform(kb, (n_out,), jnp.float32, -bound, bound)
        params.append((w, b))
    return params


def prepare_mlp_params(params, *, force_tiled=False):
    """One-time packing: transpose, bf16 cast, zero-pad, and (if fused) stack.

    Do this once; mlp_forward then never re-materializes padded weights.
    Note: bf16 weight/activation operands (f32 accumulation) differ from a pure
    f32 PyTorch MLP at roughly the 1e-2 level -- this is intentional.
    """
    if not params:
        return {"mode": "empty", "num_layers": 0}

    num_layers = len(params)
    dims_in = [int(w.shape[1]) for w, _ in params]
    dims_out = [int(w.shape[0]) for w, _ in params]
    input_dim, output_dim = dims_in[0], dims_out[-1]
    d_max = max(_pad_feature(d) for d in dims_in + dims_out)

    budget = int(_vmem_physical_bytes() * 0.7)
    fused_tm_cap = 0
    for cand in (512, 256, 128, 64, 32, 16, 8):
        # 2x streamed (1,D,D) bf16 weight blocks + activation tiles/temps
        est = 4 * d_max * d_max + 22 * cand * d_max + (1 << 20)
        if est <= budget:
            fused_tm_cap = cand
            break
    use_fused = (not force_tiled) and fused_tm_cap >= _SUBLANE

    prepared = {"mode": "fused" if use_fused else "tiled",
                "num_layers": num_layers,
                "input_dim": input_dim,
                "output_dim": output_dim}

    if use_fused:
        w_stack = jnp.zeros((num_layers, d_max, d_max), jnp.bfloat16)
        b_stack = jnp.zeros((num_layers, 1, d_max), jnp.float32)
        for l, (w, b) in enumerate(params):
            n_out, n_in = int(w.shape[0]), int(w.shape[1])
            wt = jnp.asarray(w, jnp.float32).T.astype(jnp.bfloat16)
            w_stack = w_stack.at[l, :n_in, :n_out].set(wt)
            b_stack = b_stack.at[l, 0, :n_out].set(jnp.asarray(b, jnp.float32))
        prepared.update(d_max=d_max, fused_tm_cap=fused_tm_cap,
                        w_stack=w_stack, b_stack=b_stack)
    else:
        layers = []
        for w, b in params:
            n_out, n_in = int(w.shape[0]), int(w.shape[1])
            kp, npd = _pad_feature(n_in), _pad_feature(n_out)
            w_pad = jnp.zeros((kp, npd), jnp.bfloat16)
            w_pad = w_pad.at[:n_in, :n_out].set(
                jnp.asarray(w, jnp.float32).T.astype(jnp.bfloat16))
            b_pad = jnp.zeros((1, npd), jnp.float32)
            b_pad = b_pad.at[0, :n_out].set(jnp.asarray(b, jnp.float32))
            layers.append((w_pad, b_pad, n_in, n_out))
        prepared.update(layers=layers)
    return prepared


def mlp_forward(x, params_or_prepared):
    """x: [..., input_dim].  Linear (+ exact GELU on all but the last layer)."""
    prepared = (params_or_prepared if isinstance(params_or_prepared, dict)
                else prepare_mlp_params(params_or_prepared))
    if prepared["mode"] == "empty":
        return x

    orig_shape = x.shape
    in_dim = int(orig_shape[-1])
    assert in_dim == prepared["input_dim"]
    m = 1
    for d_ in orig_shape[:-1]:
        m *= int(d_)
    x2 = x.reshape(m, in_dim).astype(jnp.float32)

    num_layers = prepared["num_layers"]
    out_dim = prepared["output_dim"]
    mpad, tm = _pick_m_tiling(m)

    if prepared["mode"] == "fused":
        d_max = prepared["d_max"]
        cap = prepared["fused_tm_cap"]
        if tm > cap:
            tm = cap
            mpad = _round_up(m, tm)
        x_pad = jnp.zeros((mpad, d_max), jnp.bfloat16)
        x_pad = x_pad.at[:m, :in_dim].set(x2.astype(jnp.bfloat16))
        out = _pallas_mlp_fused(x_pad, prepared["w_stack"], prepared["b_stack"],
                                tm=tm, num_layers=num_layers,
                                out_dtype=jnp.float32)
        out = out[:m, :out_dim]
    else:
        k0 = _pad_feature(in_dim)
        h = jnp.zeros((mpad, k0), jnp.bfloat16)
        h = h.at[:m, :in_dim].set(x2.astype(jnp.bfloat16))
        for l, (w_pad, b_pad, _, _) in enumerate(prepared["layers"]):
            is_last = l == num_layers - 1
            out_dtype = jnp.float32 if is_last else jnp.bfloat16
            h = _pallas_linear(h, w_pad, b_pad, tm=tm,
                               apply_gelu=not is_last, out_dtype=out_dtype)
        out = h[:m, :out_dim].astype(jnp.float32)

    return out.reshape(orig_shape[:-1] + (out_dim,))


if __name__ == "__main__":
    key = jax.random.PRNGKey(0)
    k_x, k_p = jax.random.split(key)

    batch, seq = 2, 8
    input_dim, hidden_dim, output_dim, num_layers = 32, 32, 16, 3

    x = jax.random.normal(k_x, (batch, seq, input_dim), jnp.float32)
    params = init_mlp_params(k_p, input_dim, hidden_dim, output_dim, num_layers)

    # Pure-JAX reference using the same bf16-operand / f32-accumulate math.
    def reference(x, params):
        y = x.reshape(-1, x.shape[-1]).astype(jnp.float32)
        for i, (w, b) in enumerate(params):
            y = jnp.dot(y.astype(jnp.bfloat16), w.T.astype(jnp.bfloat16),
                        preferred_element_type=jnp.float32) + b
            if i < len(params) - 1:
                y = _gelu_exact(y)
        return y.reshape(x.shape[:-1] + (params[-1][0].shape[0],))

    ref = reference(x, params)

    # Fused single-call path (weights streamed layer-by-layer, acts in VMEM).
    prepared_fused = prepare_mlp_params(params)
    out_fused = mlp_forward(x, prepared_fused)
    jax.block_until_ready(out_fused)
    assert out_fused.shape == (batch, seq, output_dim)
    assert jnp.allclose(out_fused, ref, atol=2e-2, rtol=2e-2), (
        float(jnp.max(jnp.abs(out_fused - ref))))

    # General tiled per-layer path (very-large-model fallback) — exercised too.
    prepared_tiled = prepare_mlp_params(params, force_tiled=True)
    out_tiled = mlp_forward(x, prepared_tiled)
    jax.block_until_ready(out_tiled)
    assert out_tiled.shape == (batch, seq, output_dim)
    assert jnp.allclose(out_tiled, ref, atol=2e-2, rtol=2e-2), (
        float(jnp.max(jnp.abs(out_tiled - ref))))

    print("KERNEL_OK")
</pallas_src>

<mosaic_0001>
module attributes {stable_mosaic.version = 11 : i64} {
  func.func @_fused_mlp_kernel(%arg0: i32, %arg1: i32, %arg2: memref<8x128xbf16, #tpu.memory_space<vmem>>, %arg3: memref<1x128x128xbf16, #tpu.memory_space<vmem>>, %arg4: memref<1x1x128xf32, #tpu.memory_space<vmem>>, %arg5: memref<8x128xf32, #tpu.memory_space<vmem>>, %arg6: memref<8x128xbf16, #tpu.memory_space<vmem>>) attributes {dimension_semantics = [#tpu.dimension_semantics<parallel>, #tpu.dimension_semantics<arbitrary>], iteration_bounds = array<i64: 2, 3>, scalar_prefetch = 0 : i64, scratch_operands = 1 : i64, tpu.core_type = #tpu.core_type<tc>, window_params = [{transform_indices = @transform_0, window_bounds = array<i64: 8, 128>}, {transform_indices = @transform_1, window_bounds = array<i64: 1, 128, 128>}, {transform_indices = @transform_2, window_bounds = array<i64: 1, 1, 128>}, {transform_indices = @transform_3, window_bounds = array<i64: 8, 128>}]} {
    %c0_i32 = arith.constant 0 : i32
    %0 = arith.cmpi eq, %arg1, %c0_i32 : i32
    %1 = arith.extui %0 : i1 to i32
    %c0_i32_0 = arith.constant 0 : i32
    %2 = arith.cmpi ne, %1, %c0_i32_0 : i32
    scf.if %2 {
      %c0_11 = arith.constant 0 : index
      %c0_12 = arith.constant 0 : index
      %17 = vector.load %arg2[%c0_11, %c0_12] : memref<8x128xbf16, #tpu.memory_space<vmem>>, vector<8x128xbf16>
      %c0_13 = arith.constant 0 : index
      %c0_14 = arith.constant 0 : index
      %18 = vector.load %arg6[%c0_13, %c0_14] : memref<8x128xbf16, #tpu.memory_space<vmem>>, vector<8x128xbf16>
      tpu.vector_store %arg6[%c0_13, %c0_14], %17 {strides = array<i32>} : memref<8x128xbf16, #tpu.memory_space<vmem>>, vector<8x128xbf16>,
    } else {
    }
    %c0 = arith.constant 0 : index
    %c0_1 = arith.constant 0 : index
    %3 = vector.load %arg6[%c0, %c0_1] : memref<8x128xbf16, #tpu.memory_space<vmem>>, vector<8x128xbf16>
    %c0_2 = arith.constant 0 : index
    %c0_3 = arith.constant 0 : index
    %c0_4 = arith.constant 0 : index
    %4 = vector.load %arg3[%c0_2, %c0_3, %c0_4] : memref<1x128x128xbf16, #tpu.memory_space<vmem>>, vector<1x128x128xbf16>
    %5 = vector.shape_cast %4 : vector<1x128x128xbf16> to vector<128x128xbf16>
    %cst = arith.constant dense<0.000000e+00> : vector<8x128xf32>
    %6 = tpu.matmul %3, %5, %cst {dimension_numbers = #tpu.dot_dimension_numbers<[1], [0], [0], [1], [0, 0, 1, 1], [], []>} : vector<8x128xbf16>, vector<128x128xbf16>, vector<8x128xf32> -> vector<8x128xf32>
    %c0_5 = arith.constant 0 : index
    %c0_6 = arith.constant 0 : index
    %c0_7 = arith.constant 0 : index
    %7 = vector.load %arg4[%c0_5, %c0_6, %c0_7] : memref<1x1x128xf32, #tpu.memory_space<vmem>>, vector<1x1x128xf32>
    %8 = vector.shape_cast %7 : vector<1x1x128xf32> to vector<1x128xf32>
    %9 = vector.broadcast %8 : vector<1x128xf32> to vector<8x128xf32>
    %10 = arith.addf %6, %9 : vector<8x128xf32>
    %c2_i32 = arith.constant 2 : i32
    %11 = arith.cmpi slt, %arg1, %c2_i32 : i32
    %12 = arith.extui %11 : i1 to i32
    %c0_i32_8 = arith.constant 0 : i32
    %13 = arith.cmpi ne, %12, %c0_i32_8 : i32
    scf.if %13 {
      %cst_11 = arith.constant 5.000000e-01 : f32
      %17 = vector.broadcast %cst_11 : f32 to vector<8x128xf32>
      %18 = arith.mulf %17, %10 : vector<8x128xf32>
      %cst_12 = arith.constant 0.707106769 : f32
      %19 = vector.broadcast %cst_12 : f32 to vector<8x128xf32>
      %20 = arith.mulf %10, %19 : vector<8x128xf32>
      %21 = math.erf %20 : vector<8x128xf32>
      %cst_13 = arith.constant 1.000000e+00 : f32
      %22 = vector.broadcast %cst_13 : f32 to vector<8x128xf32>
      %23 = arith.addf %22, %21 : vector<8x128xf32>
      %24 = arith.mulf %18, %23 : vector<8x128xf32>
      %25 = arith.truncf %24 : vector<8x128xf32> to vector<8x128xbf16>
      %c0_14 = arith.constant 0 : index
      %c0_15 = arith.constant 0 : index
      %26 = vector.load %arg6[%c0_14, %c0_15] : memref<8x128xbf16, #tpu.memory_space<vmem>>, vector<8x128xbf16>
      tpu.vector_store %arg6[%c0_14, %c0_15], %25 {strides = array<i32>} : memref<8x128xbf16, #tpu.memory_space<vmem>>, vector<8x128xbf16>,
    } else {
    }
    %c2_i32_9 = arith.constant 2 : i32
    %14 = arith.cmpi eq, %arg1, %c2_i32_9 : i32
    %15 = arith.extui %14 : i1 to i32
    %c0_i32_10 = arith.constant 0 : i32
    %16 = arith.cmpi ne, %15, %c0_i32_10 : i32
    scf.if %16 {
      %c0_11 = arith.constant 0 : index
      %c0_12 = arith.constant 0 : index
      %17 = vector.load %arg5[%c0_11, %c0_12] : memref<8x128xf32, #tpu.memory_space<vmem>>, vector<8x128xf32>
      tpu.vector_store %arg5[%c0_11, %c0_12], %10 {strides = array<i32>} : memref<8x128xf32, #tpu.memory_space<vmem>>, vector<8x128xf32>,
    } else {
    }
    return
  }
  func.func @transform_0(%arg0: i32, %arg1: i32) -> (i32, i32) {
    %c0_i32 = arith.constant 0 : i32
    %c0_i32_0 = arith.constant 0 : i32
    return %arg0, %c0_i32 : i32, i32
  }
  func.func @transform_1(%arg0: i32, %arg1: i32) -> (i32, i32, i32) {
    %c0_i32 = arith.constant 0 : i32
    %c0_i32_0 = arith.constant 0 : i32
    %c0_i32_1 = arith.constant 0 : i32
    return %arg1, %c0_i32, %c0_i32_0 : i32, i32, i32
  }
  func.func @transform_2(%arg0: i32, %arg1: i32) -> (i32, i32, i32) {
    %c0_i32 = arith.constant 0 : i32
    %c0_i32_0 = arith.constant 0 : i32
    %c0_i32_1 = arith.constant 0 : i32
    return %arg1, %c0_i32, %c0_i32_0 : i32, i32, i32
  }
  func.func @transform_3(%arg0: i32, %arg1: i32) -> (i32, i32) {
    %c0_i32 = arith.constant 0 : i32
    %c0_i32_0 = arith.constant 0 : i32
    return %arg0, %c0_i32 : i32, i32
  }
}

</mosaic_0001>

<bundles_post_ra>
// kernel: tpu_custom_call.1
= control target key start
LH: loop header
LB: loop body
LE: loop exit
PB: predicated region body
PF: predicated region fallthrough
CT: control target
= control target key end

     0   :  { %s1227_s0 = inlined_call_operand.hbm [shape: bf16[16,128], index: 0, kind: input, shape index: {}]   ;;  %s1228_s1 = inlined_call_operand.hbm [shape: bf16[3,128,128], index: 1, kind: input, shape index: {}]   ;;  %s1229_s2 = inlined_call_operand.hbm [shape: f32[3,1,128], index: 2, kind: input, shape index: {}]   ;;  %s1230_s3 = inlined_call_operand.hbm [shape: f32[16,128], index: 3, kind: output, shape index: {}]  }
   0x1   :  { %1241 = sst [smem:[#allocation22_spill]] %s1228_s1 }
   0x2   :  { %1242 = sst [smem:[#allocation23_spill]] %s1230_s3 }
   0x3   :  { %8 = vsyncpa [#allocation4], 0 }
   0x4   :  { %10 = vsyncpa [#allocation4 + $0x1], 0 }
   0x5   :  { %11 = vsyncpa [#allocation7], 0 }
   0x6   :  { %13 = vsyncpa [#allocation7 + $0x1], 0 }
   0x7   :  { %14 = vsyncpa [#allocation5], 0 }
   0x8   :  { %16 = vsyncpa [#allocation5 + $0x1], 0  ;;  %s972_s12 = smov 0   ;;  %s974_s13 = smov 0  }
   0x9   :  { %s976_s14 = smov 0   ;;  %s978_s15 = smov 0  }
   0xa   :  { %s980_s16 = smov 0   ;;  %s982_s17 = smov 0  }
   0xb   :  { %s984_s18 = smov 0   ;;  %s986_s19 = smov 0  }
   0xc   :  { %s988_s20 = smov 0   ;;  %s990_s21 = smov 0  }
   0xd   :  { %s992_s22 = smov 0  }
   0xe LB: > { %1243 = sst [smem:[#allocation13_spill]] %s928_s17  ;;  %s31_s23 = sadd.s32 1, %s940_s20  ;;  %s948_s22 = sphi %s992_s22, %s22_s22   ;;  %s944_s21 = sphi %s990_s21, %s1271_s21   ;;  %s940_s20 = sphi %s988_s20, %s1278_s20   ;;  %s936_s19 = sphi %s986_s19, %s1269_s19   ;;  %s932_s18 = sphi %s984_s18, %s1277_s18   ;;  %s928_s17 = sphi %s982_s17, %s1268_s17   ;;  %s924_s16 = sphi %s980_s16, %s1276_s16   ;;  %s920_s15 = sphi %s978_s15, %s1275_s15   ;;  %s916_s14 = sphi %s976_s14, %s1274_s14   ;;  %s912_s13 = sphi %s974_s13, %s1273_s13   ;;  %s908_s12 = sphi %s972_s12, %s1272_s12  }
   0xf   : > { %1244 = sst [smem:[#allocation14_spill]] %s936_s19  ;;  %p49_p0 = scmp.eq.s32.totalorder %s948_s22, 0 }
  0x10   : > { %1245 = sst [smem:[#allocation15_spill]] %s944_s21  ;;  %s67_s24 = sadd.s32 1, %s916_s14 }
  0x11   : > { %p74_p1 = scmp.ne.s32.totalorder %s916_s14, %s912_s13  ;;  %p80_p2 = scmp.ne.s32.totalorder %s912_s13, %s908_s12 }
  0x12   : > { %p1232_p4 = scmp.lt.s32.totalorder %s948_s22, 6  ;;  %s175_s25 = sand.u32 1, %s948_s22  }
  0x13   : > { %p76_p3 = por %p74_p1, %p49_p0  ;;  %s1231_s26 = sand.u32 1, %s916_s14  }
  0x14   : > { %s559_s27 = sshll.u32 %s1231_s26, 6  ;;  %s606_s28 = sshll.u32 %s940_s20, 6 }
  0x15   : > { %s1246_s1 = sld [smem:[#allocation22_spill]]  ;;  %s179_s5 = scalar_lea.vmem [#allocation6], %s559_s27 }
  0x16   : > { %s187_s6 = sshll.u32 %s179_s5, 4  ;;  %p1047_p5 = pnand %p1232_p4, %p76_p3  ;;  %s188_s6 = int_to_ptr.vmem [resolvable:$true] %s187_s6 }
  0x17   : > { %p562_p6 = scmp.ge.s32.totalorder %s948_s22, 1  ;;  %s1052_s9 = scalar_lea.sflag [#allocation7], %s175_s25 }
  0x18   : > { %s950_s10 = smov 64   ;;  %s951_s11 = smov 4  }
  0x19   : > { %p212_p7 = scmp.lt.s32.totalorder %s948_s22, 7  ;;  %s554_s29 = sadd.s32 4294967294, %s948_s22  }
  0x1a   : > { %p32_p9 = scmp.ge.s32.totalorder %s31_s23, 3  ;;  %s34_s25 = sadd.s32 1, %s944_s21 }
  0x1b   : > { %s184_s4 = scalar_lea.hbm %s1246_s1, %s606_s28  ;;  %p1058_p8 = pnand %p562_p6, %p212_p7 }
  0x1c   : > { %s185_s7 = sshll.u32 %s184_s4, 4  ;;  %s1063_s28 = sadd.s32 4294967295, %s948_s22   ;;  %s186_s7 = int_to_ptr.hbm [resolvable:$true] %s185_s7 }
  0x1d   : > { %629 = dma.hbm_to_vmem [thread:$0]  (!%p1047_p5), %s186_s7, 1024, %s188_s6, %s1052_s9, %s950_s10, %s950_s10, %s951_s11  }
  0x1e   : > { %s41_s30 = sadd.s32 1, %s928_s17  ;;  %p48_p10 = scmp.ne.s32.totalorder %s928_s17, %s924_s16 }
  0x1f   : > { %s1280_s23 = smov (%p32_p9, %s31_s23), 0  ;;  %s1282_s25 = smov (!%p32_p9, %s34_s25), %s944_s21 }
  0x20   : > { %1249 = sst [smem:[#allocation16_spill]] %s1280_s23  ;;  %p1082_p11 = por %p49_p0, %p48_p10 }
  0x21   : > { %p54_p12 = scmp.ne.s32.totalorder %s924_s16, %s920_s15  ;;  %p36_p13 = scmp.ge.s32.totalorder %s1282_s25, 2 }
  0x22   : > { %p55_p1 = scmp.eq.s32.totalorder %s1063_s28, 0  ;;  %s64_s5 = ssub.s32 %s940_s20, %s1280_s23 }
  0x23   : > { %p130_p3 = scmp.eq.s32.totalorder %s1063_s28, 5  ;;  %s1284_s25 = smov (%p36_p13, %s1282_s25), 0 }
  0x24   : > { %1251 = sst [smem:[#allocation17_spill]] %s1284_s25  ;;  %p1097_p6 = por %p55_p1, %p54_p12 }
  0x25   : > { %p65_p0 = scmp.eq.s32.totalorder %s64_s5, 0  ;;  %s38_s7 = ssub.s32 %s944_s21, %s1284_s25 }
  0x26   : > { %p1106_p7 = por %p80_p2, %p55_p1  ;;  %p39_p9 = scmp.eq.s32.totalorder %s38_s7, 0 }
  0x27   : > { %p1113_p13 = por %p130_p3, %p48_p10  ;;  %p136_p4 = scmp.eq.s32.totalorder %s554_s29, 5 }
  0x28   : > { %s1120_s26 = scalar_select %p65_p0, %s916_s14, %s67_s24  }
  0x29   : > { %s1254_s11 = scalar_select %p1113_p13, 1, 0 }
  0x2a   : > { %1256 = sst [smem:[#allocation19_spill]] %s1120_s26  ;;  %s156_s12 = sand.u32 1, %s928_s17  }
  0x2b   : > { %1255 = sst [smem:[#allocation18_spill]] %s1254_s11  ;;  %s557_s5 = sshll.u32 %s156_s12, 2 }
  0x2c   : > { %s1123_s1 = scalar_select %p39_p9, %s928_s17, %s41_s30  }
  0x2d   : > { %p1129_p2 = por %p136_p4, %p54_p12  ;;  %s558_s7 = sshll.u32 %s944_s21, 2 }
  0x2e   : > { %1257 = sst [smem:[#allocation20_spill]] %s1123_s1  ;;  %s160_s23 = scalar_lea.vmem [#allocation3], %s557_s5 }
  0x2f   : > { %s1258_s25 = scalar_select %p1129_p2, 1, 0 }
  0x30   : > { %s168_s3 = sshll.u32 %s160_s23, 4  ;;  %s164_s24 = scalar_lea.hbm %s1227_s0, %s558_s7  ;;  %s169_s3 = int_to_ptr.vmem [resolvable:$true] %s168_s3 }
  0x31   : > { %1259 = sst [smem:[#allocation21_spill]] %s1258_s25  ;;  %s166_s30 = sshll.u32 %s164_s24, 4  ;;  %s167_s30 = int_to_ptr.hbm [resolvable:$true] %s166_s30 }
  0x32   : > { %p1260_p10 = scmp.lt.s32.totalorder %s948_s22, 6  ;;  %s203_s17 = scalar_lea.hbm %s1229_s2, %s940_s20 }
  0x33   : > { %s157_s26 = scalar_lea.sflag [#allocation4], %s156_s12  ;;  %s205_s21 = sshll.u32 %s203_s17, 4  ;;  %s206_s21 = int_to_ptr.hbm [resolvable:$true] %s205_s21 }
  0x34   : > { %p624_p1 = pnand %p1260_p10, %p1082_p11  ;;  %s1261_s25 = sand.u32 1, %s916_s14  }
  0x35   : > { %s200_s5 = scalar_lea.vmem [#allocation8], %s1261_s25  ;;  %216 = sbr.rel (%p1058_p8) target bundleno = 323 (0x143), region = 32 }
  0x36   : > { %626 = dma.hbm_to_vmem [thread:$0]  (!%p624_p1), %s167_s30, 64, %s169_s3, %s157_s26  }
  0x37   : > { %s207_s23 = sshll.u32 %s200_s5, 4  ;;  %s1153_s19 = sand.u32 (!%p1058_p8), 1, %s924_s16   ;;  %s208_s23 = int_to_ptr.vmem [resolvable:$true] %s207_s23 }
  0x38   : > { %632 = dma.hbm_to_vmem [thread:$0]  (!%p1047_p5), %s206_s21, 16, %s208_s23, %s1052_s9  }
  0x39   : > { %s563_s1 = sshll.u32 (!%p1058_p8), %s1153_s19, 2  ;;  %s219_s4 = scalar_lea.sflag (!%p1058_p8), [#allocation4], %s1153_s19 }
  0x3a   : > { %s222_s3 = scalar_lea.vmem [#allocation3], %s563_s1 }
  0x3b   : > { %895 = dma.done.wait (%p1097_p6), %s219_s4, 64  }
  0x3c   : > { %897 = vsyncadd (%p1097_p6), %s219_s4, 4294967232  ;;  %s228_s17 = sand.u32 1, %s1063_s28   ;;  %s230_s21 = sand.u32 1, %s912_s13  }
  0x3d   : > { %s564_s26 = sshll.u32 %s230_s21, 6  ;;  %s229_s8 = scalar_lea.sflag [#allocation7], %s228_s17 }
  0x3e   : > { %s232_s9 = scalar_lea.vmem [#allocation6], %s564_s26 }
  0x3f   : > { %899 = dma.done.wait (%p1106_p7), %s229_s8, 1040  }
  0x40   : > { %901 = vsyncadd (%p1106_p7), %s229_s8, 4294966256  ;;  %s565_s27 = sshll.u32 %s1153_s19, 3  ;;  %s241_s25 = scalar_lea.vmem [#allocation8], %s230_s21 }
  0x41   : > { %s1168_s11 = scalar_lea.vmem [#allocation9], %s565_s27  ;;  %p566_p4 = scmp.ne.s32.totalorder %s932_s18, 0 }
  0x43   : > { %277 = sbr.rel (%p566_p4) target bundleno = 74 (0x4a), region = 48 }
  0x48   : > { %v278_v0 = vld [vmem:[%s222_s3] sm:$0xf] }
  0x49   : > { %279 = vst [vmem:[#allocation2] sm:$0xf] %v278_v0 }
  0x4a PF: > { %v614_v1 = vld [vmem:[%s232_s9 + $0x38] sm:$0xff]  ;;  %v613_v2 = vld [vmem:[%s232_s9 + $0x30] sm:$0xff]  ;;  %v612_v3 = vld [vmem:[%s232_s9 + $0x28] sm:$0xff]  ;;  %p599_p5 = scmp.ge.s32.totalorder %s932_s18, 2 }
  0x4b   : > { %349 = vmatpush.bf16.msra.mxu0 %v614_v1  ;;  %v611_v4 = vld [vmem:[%s232_s9 + $0x20] sm:$0xff]  ;;  %v610_v5 = vld [vmem:[%s232_s9 + $0x18] sm:$0xff]  ;;  %v609_v6 = vld [vmem:[%s232_s9 + $0x10] sm:$0xff] }
  0x4c   : > { %v608_v7 = vld [vmem:[%s232_s9 + $0x8] sm:$0xff]  ;;  %v607_v8 = vld [vmem:[%s232_s9] sm:$0xff]  ;;  %v729_v10 = vld [vmem:[%s241_s25] ss:$0 sm:$0xff] }
  0x4f   : > { %350 = vmatpush.bf16.msra.mxu0 %v613_v2 }
  0x50   : > { %v280_v9 = vld [vmem:[#allocation2] sm:$0xf] }
  0x53   : > { %351 = vmatpush.bf16.msra.mxu0 %v612_v3 }
  0x57   : > { %352 = vmatpush.bf16.msra.mxu0 %v611_v4 }
  0x5b   : > { %353 = vmatpush.bf16.msra.mxu0 %v610_v5 }
  0x5f   : > { %354 = vmatpush.bf16.msra.mxu0 %v609_v6 }
  0x63   : > { %355 = vmatpush.bf16.msra.mxu0 %v608_v7 }
  0x67   : > { %356 = vmatpush.bf16.msra.mxu0 %v607_v8 }
  0x6a   : > { %357 = vmatmul.bf16.vlgmr.msra.gmra.mxu0 %v280_v9 }
  0xe7   : > { %v358_v11 = vpop.f32.mrf.mxu0 }
  0xe8   : > { %v359_v12 = vadd.f32 %v729_v10, %v358_v11 }
  0xeb   : > { %365 = sbr.rel (%p599_p5) target bundleno = 294 (0x126), region = 52 }
  0xef   : > { %v360_v13 = vpop.f32.mrf.mxu0 }
  0xf0   : > { %v367_v14 = vmul.f32 0.70710677, %v359_v12  ;;  %v366_v49 = vmul.f32 0.5, %v359_v12 }
  0xf2   : > { %v368_v15 = vmul.f32 %v367_v14, %v367_v14 }
  0xf4   : > { %v369_v16 = vmin.f32 %v368_v15, 16.0 }
  0xf6   : > { %v370_v17 = vmul.f32 2.1237322e-06, %v369_v16  ;;  %v381_v18 = vmul.f32 3.8918573e-05, %v369_v16 }
  0xf8   : > { %v371_v19 = vadd.f32 0.00028619796, %v370_v17  ;;  %v382_v20 = vadd.f32 0.001143296, %v381_v18 }
  0xfa   : > { %v372_v21 = vmul.f32 %v371_v19, %v369_v16  ;;  %v383_v22 = vmul.f32 %v382_v20, %v369_v16 }
  0xfc   : > { %v373_v23 = vadd.f32 0.0036580483, %v372_v21  ;;  %v384_v24 = vadd.f32 0.014752088, %v383_v22 }
  0xfe   : > { %v374_v25 = vmul.f32 %v373_v23, %v369_v16  ;;  %v385_v26 = vmul.f32 %v384_v24, %v369_v16 }
 0x100   : > { %v386_v27 = vadd.f32 0.112945676, %v385_v26  ;;  %v375_v28 = vadd.f32 0.05243302, %v374_v25 }
 0x102   : > { %v387_v29 = vmul.f32 %v386_v27, %v369_v16  ;;  %v376_v31 = vmul.f32 %v375_v28, %v369_v16 }
 0x104   : > { %v388_v30 = vadd.f32 0.4994258, %v387_v29  ;;  %v377_v34 = vadd.f32 0.18741608, %v376_v31 }
 0x106   : > { %v389_v32 = vmul.f32 %v388_v30, %v369_v16  ;;  %v378_v35 = vmul.f32 %v377_v34, %v369_v16 }
 0x108   : > { %v390_v33 = vadd.f32 1.0, %v389_v32  ;;  %v379_v38 = vadd.f32 1.1283791, %v378_v35 }
 0x10a   : > { %730 = vrcp.f32 %v390_v33  ;;  %v402_v39 = vand.u32 2147483648, %v390_v33  ;;  %vm396_vm0 = vweird.f32 %v390_v33  ;;  %v400_v41 = vand.u32 2147483647, %v390_v33 }
 0x10b   : > { %v380_v44 = vmul.f32 %v379_v38, %v367_v14 }
 0x10c   : > { %v403_v43 = vor.u32 1.1754944e-38, %v402_v39  ;;  %vm401_vm3 = vcmp.eq.f32.partialorder %v400_v41, 8.507059e+37 }
 0x110   : > { %v731_v36 = vpop.eup %730 }
 0x111   : > { %v392_v37 = vmul.f32 %v731_v36, %v390_v33  ;;  %vm397_vm1 = vweird.f32 %v731_v36 }
 0x112   : > { %vm398_vm2 = vmor %vm396_vm0, %vm397_vm1 }
 0x113   : > { %v393_v40 = vsub.f32 1.0, %v392_v37 }
 0x115   : > { %v394_v42 = vmul.f32 %v731_v36, %v393_v40 }
 0x117   : > { %v395_v45 = vadd.f32 %v731_v36, %v394_v42 }
 0x119   : > { %v399_v46 = vsel %vm398_vm2, %v731_v36, %v395_v45 }
 0x11a   : > { %v404_v47 = vsel %vm401_vm3, %v403_v43, %v399_v46 }
 0x11b   : > { %v405_v48 = vmul.f32 %v404_v47, %v380_v44 }
 0x11d   : > { %v600_v50 = vclamps-f32 %v405_v48, 1.0 }
 0x11f   : > { %v408_v51 = vadd.f32 1.0, %v600_v50 }
 0x121   : > { %v409_v52 = vmul.f32 %v408_v51, %v366_v49 }
 0x123   : > { %v410_v53 = vpack.c.bf16 %v409_v52, %v409_v52 }
 0x125   : > { %411 = vst [vmem:[#allocation2] sm:$0xf] %v410_v53 }
 0x126 PF: > { %p601_p8 = scmp.ne.s32.totalorder %s932_s18, 2 }
 0x128   : > { %415 = sbr.rel (%p601_p8) target bundleno = 302 (0x12e), region = 56 }
 0x12d   : > { %416 = vst [vmem:[%s1168_s11] sm:$0xff] %v359_v12 }
 0x12e PF: > { %s1262_s28 = sld [smem:[#allocation14_spill]]  ;;  %s430_s29 = sshll.u32 %s1168_s11, 4  ;;  %s431_s29 = int_to_ptr.vmem [resolvable:$true] %s430_s29 }
 0x12f   : > { %s1264_s24 = sld [smem:[#allocation23_spill]]  ;;  %s418_s23 = scalar_lea.sflag [#allocation5], %s1153_s19 }
 0x134   : > { %s603_s10 = sshll.u32 %s1262_s28, 3 }
 0x135   : > { %s428_s30 = scalar_lea.hbm %s1264_s24, %s603_s10  ;;  %s842_s17 = scalar_lea.hbm %s1264_s24, 16 }
 0x136   : > { %s432_s5 = sshll.u32 %s428_s30, 4  ;;  %s433_s5 = int_to_ptr.hbm [resolvable:$true] %s432_s5 }
 0x137   : > { %s836_s1 = sshra.s32 %s433_s5, 4  ;;  %s837_s1 = int_to_ptr.hbm [resolvable:$true] %s836_s1 }
 0x138   : > { %s838_s18 = scalar_lea.hbm %s837_s1, 8  ;;  %p843_p6 = scmp.lt.s32.totalorder %s837_s1, %s1264_s24 }
 0x139   : > { %p839_p11 = scmp.ne.s32.totalorder %s837_s1, %s838_s18  ;;  %p844_p0 = scmp.lt.s32.totalorder %s842_s17, %s838_s18 }
 0x13b   : > { %p840_p12 = pnand %p839_p11, %p1113_p13  ;;  %p845_p7 = por %p844_p0, %p843_p6 }
 0x13d   : > { %p841_p3 = pneg %p840_p12 }
 0x13f   : > { %p846_p9 = pnand %p845_p7, %p841_p3 }
 0x141   : > { %849 = shalt.err (!%p846_p9)
}
 0x142   : > { %621 = dma.vmem_to_hbm [thread:$0]  (%p1113_p13), %s431_s29, 128, %s433_s5, %s418_s23  }
 0x143 PF: > { %p638_p10 = scmp.ge.s32.totalorder %s948_s22, 2  ;;  %s444_s8 = sand.u32 1, %s920_s15  }
 0x144   : > { %s445_s9 = scalar_lea.sflag [#allocation5], %s444_s8 }
 0x145   : > { %p634_p1 = pnand %p638_p10, %p1129_p2 }
 0x147   : > { %p635_p4 = pneg %p634_p1 }
 0x149   : > { %903 = dma.done.wait (%p635_p4), %s445_s9, 128  }
 0x14a   : > { %905 = vsyncadd (%p635_p4), %s445_s9, 4294967168  ;;  %s22_s22 = sadd.s32 1, %s948_s22   ;;  %s1266_s27 = sld [smem:[#allocation19_spill]] }
 0x14b   : > { %p19_p5 = scmp.ge.s32.totalorder %s22_s22, 8   ;;  %s1267_s25 = sld [smem:[#allocation13_spill]] }
 0x14c   : > { %s1268_s17 = sld [smem:[#allocation20_spill]]  ;;  %s1272_s12 = smov %s912_s13 }
 0x14d   : > { %s1269_s19 = sld [smem:[#allocation15_spill]]  ;;  %s1273_s13 = smov %s916_s14 }
 0x14e   : > { %s1270_s11 = sld [smem:[#allocation16_spill]]  ;;  %s1275_s15 = smov %s924_s16 }
 0x14f   : > { %s1271_s21 = sld [smem:[#allocation17_spill]]  ;;  %s1277_s18 = smov %s940_s20 }
 0x150   : > { %s1274_s14 = smov %s1266_s27  ;;  %21 = sbr.rel (!%p19_p5) target bundleno = 14 (0xe), region = 113 }
 0x151   : > { %s1276_s16 = smov %s1267_s25 }
 0x154   : > { %s1278_s20 = smov %s1270_s11 }
 0x155   :  { %451 = vsyncpa [#allocation4], 1 }
 0x156   :  { %453 = vsyncpa [#allocation4 + $0x1], 1 }
 0x157   :  { %454 = vsyncpa [#allocation7], 1 }
 0x158   :  { %456 = vsyncpa [#allocation7 + $0x1], 1 }
 0x159   :  { %457 = vsyncpa [#allocation5], 1 }
 0x15a   :  { %459 = vsyncpa [#allocation5 + $0x1], 1 }

</bundles_post_ra>
